<compile_context>
chip_gen: v5e
topology: v5e:2x2
jax: 0.10.0
libtpu: 0.0.40
codegen_flags: <defaults>
</compile_context>

<pallas_src>
import numpy as np
import jax
import jax.numpy as jnp
from jax.experimental import pallas as pl
from jax.experimental.pallas import tpu as pltpu

F32 = jnp.float32

IMG_SIZE = 32          # image_encoder.img_size
PATCH = 8
EMBED_DIM = 32         # ViT embed dim == prompt embed dim == decoder transformer dim
NUM_MASK_TOKENS = 4    # num_multimask_outputs (3) + 1
PE_FEATS = EMBED_DIM // 2
GRID = IMG_SIZE // PATCH          # image-embedding spatial size (4x4)
S_TOK = GRID * GRID               # number of image tokens
C1 = EMBED_DIM // 4               # first upscale channels (8)
C2 = EMBED_DIM // 8               # second upscale channels (4)
MASK_THRESHOLD = 0.5              # the provided module sets mask_threshold = 0.5
PD = 3 * PATCH * PATCH            # flattened patch size (192)

# ---------------------------------------------------------------------------
# packed-slab row offsets (module-level constants; pack_params() must match)
# ---------------------------------------------------------------------------
# bias slab: rows of EMBED_DIM lanes
B_POS = 0            # pos_embed (S_TOK rows)
B_PE = 16            # dense PE  (S_TOK rows)
B_ATTN = 32          # decoder attn biases, layer*4 + {q,k,v,out} (16 rows)
B_PATCH = 48
B_BQ, B_BK, B_BV, B_PROJ = 49, 50, 51, 52
B_EMLP2 = 53
B_LN1W, B_LN1B, B_LN2W, B_LN2B = 54, 55, 56, 57
B_NECKW, B_NECKB = 58, 59
B_NOMASK = 60
B_DMLP2 = 61
B_DLNW = 62          # 5 rows
B_DLNB = 67          # 5 rows
B_HYP0 = 72          # 4 rows
B_HYP1 = 76          # 4 rows
B_IOU0, B_IOU1 = 80, 81
B_UP1B = 82          # up1 bias tiled over the 4 sub-positions (4*C1 = D lanes)
B_UPLNW, B_UPLNB = 83, 84
B_UP2B = 85          # up2 bias tiled over 4 sub-positions, padded to D lanes
B_IOU2 = 86          # padded to D lanes
BIAS_ROWS = 87

# mats slab: (D, D) matrices
M_WQ, M_WK, M_WV, M_PROJ, M_NECK = 0, 1, 2, 3, 4
M_ATTN = 5           # 16 entries, layer*4 + {q,k,v,out}
M_IOU0, M_IOU1 = 21, 22
M_HYP0 = 23          # 4
M_HYP1 = 27          # 4
M_UP1 = 31           # up1_w packed (D, 4*C1)
M_IOU2 = 32          # iou_w2 padded (D, D)
MATS_ROWS = 33

# pw2 slab: rows of D lanes
PW_PATCH = 0                     # patch_w    (192 rows)
PW_EMLP2 = PD                    # vit_mlp_w2 (4D rows)
PW_DMLP2 = PD + 4 * EMBED_DIM    # dec_mlp_w2 (2D rows)
PW2_ROWS = PW_DMLP2 + 2 * EMBED_DIM

# wide slab: rows of 4D lanes
W_EMLP1 = 0
W_DMLP1 = EMBED_DIM              # padded to 4D lanes (first 2D valid)
W_EMLP1B = 2 * EMBED_DIM
W_DMLP1B = 2 * EMBED_DIM + 1
WIDE_ROWS = 2 * EMBED_DIM + 2

# small slab: rows of 4*C2 (=16) lanes
SM_HB2 = 0                       # hyper_b2 (4 rows, first C2 lanes valid)
SM_UP2W = NUM_MASK_TOKENS        # up2_w packed (C1 rows, 4*C2 lanes)
SMALL_ROWS = NUM_MASK_TOKENS + C1
SMALL_LANES = 4 * C2


def _full_spec(shape):
    return pl.BlockSpec(shape, lambda *_: (0,) * len(shape))


def _bilinear_matrix_np(out_size, in_size):
    # F.interpolate(mode='bilinear', align_corners=False) as a matrix (host constant).
    i = np.arange(out_size, dtype=np.float64)
    src = (i + 0.5) * (in_size / out_size) - 0.5
    src = np.clip(src, 0.0, in_size - 1.0)
    i0 = np.floor(src).astype(np.int64)
    i1 = np.minimum(i0 + 1, in_size - 1)
    w1 = src - i0
    w0 = 1.0 - w1
    M = np.zeros((out_size, in_size), np.float64)
    np.add.at(M, (np.arange(out_size), i0), w0)
    np.add.at(M, (np.arange(out_size), i1), w1)
    return M.astype(np.float32)


# ----------------------------------------------------------------------------
# Kernel 1: batched per-channel affine (normalize) + separable bilinear resize
#   out[c] = a[c] * (Mr @ x[c] @ Mc^T) + b[c] * K    (pad / crop folded into Mr, Mc;
#   K = Mr @ 1 @ Mc^T precomputed on the host).  One grid step for the whole batch.
# ----------------------------------------------------------------------------
def _affine_resize_kernel(x_ref, a_ref, b_ref, mr_ref, mct_ref, k_ref, o_ref):
    x = x_ref[...]                                              # (N, H, W)
    n = x.shape[0]
    mr = mr_ref[...]
    mrb = jnp.broadcast_to(mr[None], (n,) + mr.shape)
    t = jnp.einsum('noh,nhw->now', mrb, x, preferred_element_type=jnp.float32)
    r = jnp.einsum('now,wc->noc', t, mct_ref[...], preferred_element_type=jnp.float32)
    o_ref[...] = (a_ref[...][:, :, None] * r
                  + b_ref[...][:, :, None] * k_ref[...][None])


def _affine_resize(x, a, b, mr, mct, k):
    N, H, W = x.shape
    OH, OW = mr.shape[0], mct.shape[1]
    return pl.pallas_call(
        _affine_resize_kernel,
        out_shape=jax.ShapeDtypeStruct((N, OH, OW), F32),
        in_specs=[_full_spec((N, H, W)), _full_spec((N, 1)), _full_spec((N, 1)),
                  _full_spec((OH, H)), _full_spec((W, OW)), _full_spec((OH, OW))],
        out_specs=_full_spec((N, OH, OW)),
    )(x.astype(F32), a.astype(F32), b.astype(F32),
      mr.astype(F32), mct.astype(F32), k.astype(F32))


def _resize_kernel(x_ref, mr_ref, mct_ref, o_ref):
    x = x_ref[...]
    n = x.shape[0]
    mr = mr_ref[...]
    mrb = jnp.broadcast_to(mr[None], (n,) + mr.shape)
    t = jnp.einsum('noh,nhw->now', mrb, x, preferred_element_type=jnp.float32)
    o_ref[...] = jnp.einsum('now,wc->noc', t, mct_ref[...],
                            preferred_element_type=jnp.float32)


def _resize(x, mr, mct):
    N, H, W = x.shape
    OH, OW = mr.shape[0], mct.shape[1]
    return pl.pallas_call(
        _resize_kernel,
        out_shape=jax.ShapeDtypeStruct((N, OH, OW), F32),
        in_specs=[_full_spec((N, H, W)), _full_spec((OH, H)), _full_spec((W, OW))],
        out_specs=_full_spec((N, OH, OW)),
    )(x.astype(F32), mr.astype(F32), mct.astype(F32))


# ----------------------------------------------------------------------------
# Kernel 2: fused image encoder + mask decoder per batch item, grid=(B,)
#   (patch embed + ViT block + neck -> two-way transformer -> upscaling ->
#    hyper-MLPs -> IoU head), lane-dense (4, 16*S) mask output.
# ----------------------------------------------------------------------------
def _fused_sam_kernel(patch_ref, tok_ref, mats_ref, bias_ref, pw2_ref, wide_ref,
                      hw2_ref, small_ref, masks_ref, iou_ref):
    D = EMBED_DIM
    f32 = jnp.float32

    def row(i):
        return bias_ref[i:i + 1]                                 # (1, D)

    def mm(a, b):
        return jnp.dot(a, b, preferred_element_type=f32)

    def ln(v, w, b, eps):
        mu = jnp.mean(v, axis=-1, keepdims=True)
        var = jnp.mean((v - mu) ** 2, axis=-1, keepdims=True)
        return (v - mu) * jax.lax.rsqrt(var + eps) * w + b

    # ---------------- image encoder (patch embed + 1 ViT block + neck) -----------
    # TODO(synk): real SAM ViT uses multi-head windowed attention and several blocks;
    # a synthetic single-head single-block ViT is used (module internals not provided).
    x = patch_ref[0]                                             # (S, 3*P*P)
    tok = mm(x, pw2_ref[PW_PATCH:PW_PATCH + PD]) + row(B_PATCH) \
        + bias_ref[B_POS:B_POS + S_TOK]

    h = ln(tok, row(B_LN1W), row(B_LN1B), 1e-6)
    q = mm(h, mats_ref[M_WQ]) + row(B_BQ)
    k = mm(h, mats_ref[M_WK]) + row(B_BK)
    v = mm(h, mats_ref[M_WV]) + row(B_BV)
    logits = jax.lax.dot_general(q, k, (((1,), (1,)), ((), ())),
                                 preferred_element_type=f32) * (D ** -0.5)
    a = jax.nn.softmax(logits, axis=-1)
    attn_out = mm(mm(a, v), mats_ref[M_PROJ]) + row(B_PROJ)
    x1 = tok + attn_out

    h = ln(x1, row(B_LN2W), row(B_LN2B), 1e-6)
    h = jax.nn.gelu(mm(h, wide_ref[W_EMLP1:W_EMLP1 + D])
                    + wide_ref[W_EMLP1B:W_EMLP1B + 1])
    h = mm(h, pw2_ref[PW_EMLP2:PW_EMLP2 + 4 * D]) + row(B_EMLP2)
    x2 = x1 + h

    # neck: 1x1 conv (no bias) + LayerNorm2d (channel norm per pixel)
    # TODO(synk): the 3x3 conv of SAM's real neck is omitted (synthetic sub-module).
    src = ln(mm(x2, mats_ref[M_NECK]), row(B_NECKW), row(B_NECKB), 1e-6)

    # ---------------- mask decoder ------------------------------------------------
    src = src + row(B_NOMASK)                                    # dense no-mask embedding
    img_pe = bias_ref[B_PE:B_PE + S_TOK]                         # (S, D)
    tokens = tok_ref[0]                                          # (T, D)
    scale = D ** -0.5

    def attn_layer(q_in, k_in, v_in, wi):
        mi = M_ATTN + 4 * wi
        bi = B_ATTN + 4 * wi
        qh = mm(q_in, mats_ref[mi + 0]) + row(bi + 0)
        kh = mm(k_in, mats_ref[mi + 1]) + row(bi + 1)
        vh = mm(v_in, mats_ref[mi + 2]) + row(bi + 2)
        lg = jax.lax.dot_general(qh, kh, (((1,), (1,)), ((), ())),
                                 preferred_element_type=f32) * scale
        p_attn = jax.nn.softmax(lg, axis=-1)
        return mm(mm(p_attn, vh), mats_ref[mi + 3]) + row(bi + 3)

    def dln(vv, i):
        # nn.LayerNorm default eps (1e-5) inside the TwoWayTransformer
        return ln(vv, row(B_DLNW + i), row(B_DLNB + i), 1e-5)

    # TwoWayTransformer, depth 1, single head
    # TODO(synk): attention-downsampling and multi-head of the real MaskDecoder omitted.
    query_pe = tokens
    queries = tokens
    keys = src
    queries = attn_layer(queries, queries, queries, 0)           # self-attn (skip_first_layer_pe)
    queries = dln(queries, 0)
    q_ = queries + query_pe
    k_ = keys + img_pe
    queries = queries + attn_layer(q_, k_, keys, 1)              # token -> image
    queries = dln(queries, 1)
    hmlp = jnp.maximum(mm(queries, wide_ref[W_DMLP1:W_DMLP1 + D, 0:2 * D])
                       + wide_ref[W_DMLP1B:W_DMLP1B + 1, 0:2 * D], 0.0)
    queries = queries + (mm(hmlp, pw2_ref[PW_DMLP2:PW_DMLP2 + 2 * D]) + row(B_DMLP2))
    queries = dln(queries, 2)
    q_ = queries + query_pe
    k_ = keys + img_pe
    keys = keys + attn_layer(k_, q_, queries, 2)                 # image -> token
    keys = dln(keys, 3)
    q_ = queries + query_pe
    k_ = keys + img_pe
    queries = queries + attn_layer(q_, k_, keys, 3)              # final token -> image
    queries = dln(queries, 4)

    iou_tok = queries[0:1]                                       # (1, D)
    mask_tok = queries[1:1 + NUM_MASK_TOKENS]                    # (4, D)
    src_out = keys                                               # (S, D)

    # IoU prediction head (3-layer MLP); last layer weights/bias zero-padded to D lanes
    ih = jnp.maximum(mm(iou_tok, mats_ref[M_IOU0]) + row(B_IOU0), 0.0)
    ih = jnp.maximum(mm(ih, mats_ref[M_IOU1]) + row(B_IOU1), 0.0)
    iou_full = mm(ih, mats_ref[M_IOU2]) + row(B_IOU2)
    iou_ref[0] = iou_full[:, 0:NUM_MASK_TOKENS]

    # hypernetwork MLPs (stacked weights, batched over the 4 mask tokens)
    mt = mask_tok.reshape(NUM_MASK_TOKENS, 1, D)
    hw0 = mats_ref[M_HYP0:M_HYP0 + NUM_MASK_TOKENS]             # (4, D, D)
    hw1 = mats_ref[M_HYP1:M_HYP1 + NUM_MASK_TOKENS]
    hb0 = bias_ref[B_HYP0:B_HYP0 + NUM_MASK_TOKENS][:, None, :]
    hb1 = bias_ref[B_HYP1:B_HYP1 + NUM_MASK_TOKENS][:, None, :]
    hb2 = small_ref[SM_HB2:SM_HB2 + NUM_MASK_TOKENS, 0:C2][:, None, :]
    hh = jnp.maximum(jnp.einsum('nij,njk->nik', mt, hw0,
                                preferred_element_type=f32) + hb0, 0.0)
    hh = jnp.maximum(jnp.einsum('nij,njk->nik', hh, hw1,
                                preferred_element_type=f32) + hb1, 0.0)
    hh = jnp.einsum('nij,njk->nik', hh, hw2_ref[...],
                    preferred_element_type=f32) + hb2
    hyper = hh[:, 0, :]                                          # (4, C2)

    # output upscaling: two ConvTranspose2d(k=2, s=2) expressed as lane-stacked
    # matmuls; hyper-combine as hyper @ y2^T (4, S) tiles, lane-concatenated into
    # one lane-dense (4, 16*S) store.
    up2_w = small_ref[SM_UP2W:SM_UP2W + C1]                      # (C1, 4*C2)
    up2_b = row(B_UP2B)[:, 0:4 * C2]
    upln_w = row(B_UPLNW)[:, 0:C1]
    upln_b = row(B_UPLNB)[:, 0:C1]
    y1_all = mm(src_out, mats_ref[M_UP1]) + row(B_UP1B)          # (S, 4*C1)
    tiles = []
    for s1 in range(4):
        y1 = y1_all[:, s1 * C1:(s1 + 1) * C1]                    # (S, C1)
        mu = jnp.mean(y1, axis=-1, keepdims=True)
        var = jnp.mean((y1 - mu) ** 2, axis=-1, keepdims=True)
        y1 = (y1 - mu) * jax.lax.rsqrt(var + 1e-6) * upln_w + upln_b
        y1 = jax.nn.gelu(y1)
        y2_all = jax.nn.gelu(mm(y1, up2_w) + up2_b)              # (S, 4*C2)
        for s2 in range(4):
            y2 = y2_all[:, s2 * C2:(s2 + 1) * C2]                # (S, C2)
            tiles.append(jax.lax.dot_general(
                hyper, y2, (((1,), (1,)), ((), ())),
                preferred_element_type=f32))                     # (4, S)
    masks_ref[0] = jnp.concatenate(tiles, axis=-1)               # (4, 16*S) lane-dense


def encode_and_decode(patches, tokens, packed):
    B, S, _ = patches.shape
    T = tokens.shape[1]
    slabs = (packed["mats"], packed["bias"], packed["pw2"], packed["wide"],
             packed["hyper_w2"], packed["small"])
    w_specs = [pl.BlockSpec(w.shape, (lambda b, _n=w.ndim: (0,) * _n)) for w in slabs]
    return pl.pallas_call(
        _fused_sam_kernel,
        out_shape=(jax.ShapeDtypeStruct((B, NUM_MASK_TOKENS, 16 * S_TOK), F32),
                   jax.ShapeDtypeStruct((B, 1, NUM_MASK_TOKENS), F32)),
        grid=(B,),
        in_specs=[pl.BlockSpec((1, S, PD), lambda b: (b, 0, 0)),
                  pl.BlockSpec((1, T, EMBED_DIM), lambda b: (b, 0, 0))] + w_specs,
        out_specs=(pl.BlockSpec((1, NUM_MASK_TOKENS, 16 * S_TOK), lambda b: (b, 0, 0)),
                   pl.BlockSpec((1, 1, NUM_MASK_TOKENS), lambda b: (b, 0, 0))),
        compiler_params=pltpu.CompilerParams(dimension_semantics=("parallel",)),
    )(patches.astype(F32), tokens.astype(F32), *slabs)


# ----------------------------------------------------------------------------
# Prompt encoder (plain XLA: tiny data; dense PE folded into the packed slab)
# ----------------------------------------------------------------------------
def _compute_dense_pe(p):
    ys = (np.arange(GRID, dtype=np.float32) + 0.5) / GRID
    xs = (np.arange(GRID, dtype=np.float32) + 0.5) / GRID
    yy, xx = np.meshgrid(ys, xs, indexing="ij")
    coords = np.stack([xx, yy], axis=-1).reshape(S_TOK, 2).astype(np.float32)
    c = 2.0 * coords - 1.0
    proj = (2.0 * np.pi) * (jnp.asarray(c) @ p["pe_gauss_full"]) + p["pe_phase"]
    return jnp.sin(proj)                                         # (S, D)


def _point_pe_xla(coords, labels, p):
    # coords are already in the model-input frame (per the reference docstring);
    # the prompt encoder normalizes by the model input size.
    c = coords / jnp.asarray([IMG_SIZE, IMG_SIZE], F32)
    c = 2.0 * c - 1.0
    proj = (2.0 * np.pi) * (c @ p["pe_gauss_full"]) + p["pe_phase"]
    pe = jnp.sin(proj)
    lab = labels[..., None]
    pe = jnp.where(lab == -1.0, 0.0, pe)
    pe = pe + (lab == -1.0).astype(F32) * p["not_a_point"]
    pe = pe + (lab == 0.0).astype(F32) * p["point_embed"][0]
    pe = pe + (lab == 1.0).astype(F32) * p["point_embed"][1]
    return pe


def encode_point_prompts(batched_input, p):
    entries = []
    for rec in batched_input:
        if "point_coords" in rec:
            c = rec["point_coords"].astype(F32) + 0.5            # shift to pixel centers
            l = rec["point_labels"].astype(F32)
            # pad point (boxes is None), as in SAM's PromptEncoder
            c = jnp.concatenate([c, jnp.zeros((c.shape[0], 1, 2), F32)], axis=1)
            l = jnp.concatenate([l, -jnp.ones((l.shape[0], 1), F32)], axis=1)
            entries.append((c, l))
        else:
            entries.append(None)
    if entries and all(e is not None for e in entries):
        shapes = {e[0].shape for e in entries}
        if len(shapes) == 1:
            C = jnp.stack([e[0] for e in entries], 0)
            L = jnp.stack([e[1] for e in entries], 0)
            pe = _point_pe_xla(C, L, p)                          # (B, Np, Nt, D)
            return [pe[i] for i in range(len(entries))]
    out = []
    for e in entries:
        if e is None:
            out.append(None)
            continue
        c, l = e
        out.append(_point_pe_xla(c, l, p))
    return out


# ----------------------------------------------------------------------------
# Pre/post-processing (one fused batched affine+resize kernel each)
# ----------------------------------------------------------------------------
def _preprocess_batch(images, p):
    B, C, H, W = images.shape
    t = max(H, W)
    # normalize -> zero-pad to square -> bilinear resize (pad folded into matrices)
    Mr = _bilinear_matrix_np(IMG_SIZE, t)[:, :H]
    Mc = _bilinear_matrix_np(IMG_SIZE, t)[:, :W]
    K = (Mr @ np.ones((H, W), np.float32) @ Mc.T).astype(np.float32)
    a = jnp.tile((255.0 / p["pixel_std"]).reshape(1, C), (B, 1)).reshape(B * C, 1)
    b = jnp.tile((-p["pixel_mean"] / p["pixel_std"]).reshape(1, C), (B, 1)).reshape(B * C, 1)
    out = _affine_resize(images.reshape(B * C, H, W), a, b,
                         jnp.asarray(Mr), jnp.asarray(Mc.T), jnp.asarray(K))
    return out.reshape(B, C, IMG_SIZE, IMG_SIZE)


def preprocess_images(batched_input, p):
    shapes = {tuple(rec["image"].shape) for rec in batched_input}
    if len(shapes) == 1:
        images = jnp.stack([rec["image"] for rec in batched_input], 0)
        return _preprocess_batch(images.astype(F32), p)
    # TODO(synk): heterogeneous image shapes -> per-image preprocess kernel calls.
    return jnp.concatenate(
        [_preprocess_batch(rec["image"][None].astype(F32), p) for rec in batched_input], 0)


def postprocess_masks(masks, original_size):
    # interp to (IMG,IMG) -> interp to (mx,mx) -> crop, composed into one matrix pair
    B, C, H, W = masks.shape
    oh, ow = int(original_size[0]), int(original_size[1])
    mx = max(oh, ow)
    Mr = _bilinear_matrix_np(mx, IMG_SIZE)[:oh] @ _bilinear_matrix_np(IMG_SIZE, H)
    Mc = _bilinear_matrix_np(mx, IMG_SIZE)[:ow] @ _bilinear_matrix_np(IMG_SIZE, W)
    out = _resize(masks.reshape(B * C, H, W), jnp.asarray(Mr), jnp.asarray(Mc.T))
    return out.reshape(B, C, oh, ow)


def _patchify(images):
    B = images.shape[0]
    pt = images.reshape(B, 3, GRID, PATCH, GRID, PATCH)
    return pt.transpose(0, 2, 4, 1, 3, 5).reshape(B, S_TOK, PD)


# ----------------------------------------------------------------------------
# Parameters (deterministic synthetic init) + slab packing
# ----------------------------------------------------------------------------
def init_params():
    base = jax.random.PRNGKey(0)
    counter = [0]

    def nxt(shape, scale=0.05):
        counter[0] += 1
        k = jax.random.fold_in(base, counter[0])
        return (scale * jax.random.normal(k, shape)).astype(F32)

    D = EMBED_DIM
    p = {}
    p["pixel_mean"] = jnp.array([123.675, 116.28, 103.53], F32)
    p["pixel_std"] = jnp.array([58.395, 57.12, 57.375], F32)
    # image encoder (synthetic ViT: patch-embed + 1 block + neck)
    p["patch_w"] = nxt((PD, D))
    p["patch_b"] = nxt((1, D))
    p["pos_embed"] = nxt((S_TOK, D))
    p["vit_ln1_w"] = jnp.ones((1, D), F32); p["vit_ln1_b"] = jnp.zeros((1, D), F32)
    p["vit_wq"] = nxt((D, D)); p["vit_bq"] = nxt((1, D))
    p["vit_wk"] = nxt((D, D)); p["vit_bk"] = nxt((1, D))
    p["vit_wv"] = nxt((D, D)); p["vit_bv"] = nxt((1, D))
    p["vit_proj_w"] = nxt((D, D)); p["vit_proj_b"] = nxt((1, D))
    p["vit_ln2_w"] = jnp.ones((1, D), F32); p["vit_ln2_b"] = jnp.zeros((1, D), F32)
    p["vit_mlp_w1"] = nxt((D, 4 * D)); p["vit_mlp_b1"] = nxt((1, 4 * D))
    p["vit_mlp_w2"] = nxt((4 * D, D)); p["vit_mlp_b2"] = nxt((1, D))
    p["neck_w"] = nxt((D, D))
    p["neck_ln_w"] = jnp.ones((1, D), F32); p["neck_ln_b"] = jnp.zeros((1, D), F32)
    # prompt encoder (random fourier PE; cos folded as sin(x + pi/2))
    gauss = nxt((2, PE_FEATS), scale=1.0)
    p["pe_gauss_full"] = jnp.concatenate([gauss, gauss], axis=1)
    p["pe_phase"] = jnp.concatenate([jnp.zeros((1, PE_FEATS), F32),
                                     jnp.full((1, PE_FEATS), jnp.pi / 2, F32)], axis=1)
    p["point_embed"] = nxt((2, D))
    p["not_a_point"] = nxt((1, D))
    p["no_mask_embed"] = nxt((1, D))
    # mask decoder
    p["iou_token"] = nxt((1, D))
    p["mask_tokens"] = nxt((NUM_MASK_TOKENS, D))
    p["dec_attn_w"] = nxt((4, 4, D, D))
    p["dec_attn_b"] = nxt((4, 4, 1, D))
    p["dec_mlp_w1"] = nxt((D, 2 * D)); p["dec_mlp_b1"] = nxt((1, 2 * D))
    p["dec_mlp_w2"] = nxt((2 * D, D)); p["dec_mlp_b2"] = nxt((1, D))
    p["dec_ln_w"] = jnp.ones((5, 1, D), F32); p["dec_ln_b"] = jnp.zeros((5, 1, D), F32)
    p["up1_w"] = nxt((4, D, C1)); p["up1_b"] = nxt((1, C1))
    p["up_ln_w"] = jnp.ones((1, C1), F32); p["up_ln_b"] = jnp.zeros((1, C1), F32)
    p["up2_w"] = nxt((4, C1, C2)); p["up2_b"] = nxt((1, C2))
    p["hyper_w0"] = nxt((NUM_MASK_TOKENS, D, D)); p["hyper_b0"] = nxt((NUM_MASK_TOKENS, 1, D))
    p["hyper_w1"] = nxt((NUM_MASK_TOKENS, D, D)); p["hyper_b1"] = nxt((NUM_MASK_TOKENS, 1, D))
    p["hyper_w2"] = nxt((NUM_MASK_TOKENS, D, C2)); p["hyper_b2"] = nxt((NUM_MASK_TOKENS, 1, C2))
    p["iou_w0"] = nxt((D, D)); p["iou_b0"] = nxt((1, D))
    p["iou_w1"] = nxt((D, D)); p["iou_b1"] = nxt((1, D))
    p["iou_w2"] = nxt((D, NUM_MASK_TOKENS)); p["iou_b2"] = nxt((1, NUM_MASK_TOKENS))
    return p


def pack_params(p):
    D = EMBED_DIM
    dense_pe = _compute_dense_pe(p)

    def padD(v):
        v = v.reshape(1, -1)
        return jnp.pad(v, ((0, 0), (0, D - v.shape[1])))

    # ------ mats slab (DxD matrices) -------------------------------------------
    up1_packed = jnp.transpose(p["up1_w"], (1, 0, 2)).reshape(D, 4 * C1)
    iou_w2_pad = jnp.pad(p["iou_w2"], ((0, 0), (0, D - NUM_MASK_TOKENS)))
    mats = jnp.stack(
        [p["vit_wq"], p["vit_wk"], p["vit_wv"], p["vit_proj_w"], p["neck_w"]]
        + [p["dec_attn_w"][i, j] for i in range(4) for j in range(4)]
        + [p["iou_w0"], p["iou_w1"]]
        + [p["hyper_w0"][n] for n in range(NUM_MASK_TOKENS)]
        + [p["hyper_w1"][n] for n in range(NUM_MASK_TOKENS)]
        + [up1_packed, iou_w2_pad], axis=0)
    assert mats.shape == (MATS_ROWS, D, D)

    # ------ bias slab (rows of D lanes); layout must match B_* offsets ----------
    bias_rows = [p["pos_embed"], dense_pe]
    bias_rows += [p["dec_attn_b"][i, j] for i in range(4) for j in range(4)]
    bias_rows += [p["patch_b"], p["vit_bq"], p["vit_bk"], p["vit_bv"], p["vit_proj_b"],
                  p["vit_mlp_b2"],
                  p["vit_ln1_w"], p["vit_ln1_b"], p["vit_ln2_w"], p["vit_ln2_b"],
                  p["neck_ln_w"], p["neck_ln_b"],
                  p["no_mask_embed"], p["dec_mlp_b2"]]
    bias_rows += [p["dec_ln_w"][i] for i in range(5)]
    bias_rows += [p["dec_ln_b"][i] for i in range(5)]
    bias_rows += [p["hyper_b0"][n] for n in range(NUM_MASK_TOKENS)]
    bias_rows += [p["hyper_b1"][n] for n in range(NUM_MASK_TOKENS)]
    bias_rows += [p["iou_b0"], p["iou_b1"],
                  jnp.tile(p["up1_b"], (1, 4)),
                  padD(p["up_ln_w"]), padD(p["up_ln_b"]),
                  padD(jnp.tile(p["up2_b"], (1, 4))),
                  padD(p["iou_b2"])]
    bias = jnp.concatenate(bias_rows, axis=0)
    assert bias.shape == (BIAS_ROWS, D)

    # ------ pw2 slab (rows of D lanes, large matrices) ---------------------------
    pw2 = jnp.concatenate([p["patch_w"], p["vit_mlp_w2"], p["dec_mlp_w2"]], axis=0)
    assert pw2.shape == (PW2_ROWS, D)

    # ------ wide slab (rows of 4D lanes) -----------------------------------------
    wide = jnp.concatenate([
        p["vit_mlp_w1"],
        jnp.pad(p["dec_mlp_w1"], ((0, 0), (0, 2 * D))),
        p["vit_mlp_b1"],
        jnp.pad(p["dec_mlp_b1"], ((0, 0), (0, 2 * D))),
    ], axis=0)
    assert wide.shape == (WIDE_ROWS, 4 * D)

    # ------ small slab (rows of 4*C2 lanes) --------------------------------------
    up2_packed = jnp.transpose(p["up2_w"], (1, 0, 2)).reshape(C1, 4 * C2)
    hb2 = jnp.pad(p["hyper_b2"].reshape(NUM_MASK_TOKENS, C2),
                  ((0, 0), (0, 4 * C2 - C2)))
    small = jnp.concatenate([hb2, up2_packed], axis=0)
    assert small.shape == (SMALL_ROWS, SMALL_LANES)

    return {"mats": mats, "bias": bias, "pw2": pw2, "wide": wide,
            "hyper_w2": p["hyper_w2"], "small": small}


# ----------------------------------------------------------------------------
# Forward (mirrors Samm2pt5D.forward)
# ----------------------------------------------------------------------------
def samm2pt5d_forward(params, packed, batched_input, multimask_output=False, is_train=False):
    input_images = preprocess_images(batched_input, params)         # (B, 3, 32, 32)
    patches = _patchify(input_images)                                # (B, S, 192)
    sparse_list = encode_point_prompts(batched_input, params)

    out_tok = jnp.concatenate([params["iou_token"], params["mask_tokens"]], axis=0)  # (5, D)
    tokens_list = []
    for sp in sparse_list:
        if sp is None:
            tokens_list.append(out_tok)
        else:
            assert sp.shape[0] == 1, "one prompt set per image (matches reference usage)"
            tokens_list.append(jnp.concatenate([out_tok, sp[0]], axis=0))

    t_shapes = {t.shape for t in tokens_list}
    if len(t_shapes) == 1:
        masks_raw, iou_raw = encode_and_decode(patches, jnp.stack(tokens_list, 0), packed)
    else:
        # TODO(synk): heterogeneous prompt counts -> one fused call per record.
        parts = [encode_and_decode(patches[b:b + 1], tok[None], packed)
                 for b, tok in enumerate(tokens_list)]
        masks_raw = jnp.concatenate([m for m, _ in parts], 0)
        iou_raw = jnp.concatenate([i for _, i in parts], 0)

    B = len(batched_input)
    side = 4 * GRID
    # lane index = (s1*4 + s2)*S + s  with s1=(r1,c1), s2=(r2,c2), s=(gy,gx);
    # reassemble the conv-transpose sub-positions into spatial order.
    low_all = masks_raw.reshape(B, NUM_MASK_TOKENS, 2, 2, 2, 2, GRID, GRID)
    low_all = low_all.transpose(0, 1, 6, 2, 4, 7, 3, 5).reshape(B, NUM_MASK_TOKENS, side, side)

    sel = slice(1, None) if multimask_output else slice(0, 1)
    low_sel = low_all[:, sel]                                        # (B, C_sel, 16, 16)

    outputs = []
    if is_train:
        for b in range(B):
            outputs.append({"iou_predictions": iou_raw[b][:, sel],
                            "low_res_logits": low_sel[b:b + 1]})
        return outputs

    # batch the postprocess resize across records sharing the same original_size
    groups = {}
    for b, rec in enumerate(batched_input):
        key = (int(rec["original_size"][0]), int(rec["original_size"][1]))
        groups.setdefault(key, []).append(b)
    high_res = [None] * B
    for (oh, ow), idxs in groups.items():
        stacked = low_sel[jnp.asarray(idxs)]                         # (len, C_sel, 16, 16)
        hr = postprocess_masks(stacked, (oh, ow))                    # (len, C_sel, oh, ow)
        for j, b in enumerate(idxs):
            high_res[b] = hr[j:j + 1]

    for b in range(B):
        hrb = high_res[b]
        outputs.append({"masks": hrb > MASK_THRESHOLD,
                        "iou_predictions": iou_raw[b][:, sel],
                        "low_res_logits": low_sel[b:b + 1],
                        "high_res_logits": hrb})
    return outputs


# ----------------------------------------------------------------------------
if __name__ == "__main__":
    params = init_params()
    packed = pack_params(params)
    key = jax.random.PRNGKey(0)
    k_img, k_pts = jax.random.split(key)
    batched_input = []
    for i in range(2):
        img = jax.random.uniform(jax.random.fold_in(k_img, i), (3, 20, 16), dtype=F32)
        pts = jax.random.uniform(jax.random.fold_in(k_pts, i), (1, 2, 2), dtype=F32) * (IMG_SIZE - 1)
        lbl = jnp.array([[1.0, 0.0]], F32)
        batched_input.append({"image": img, "original_size": (20, 16),
                              "point_coords": pts, "point_labels": lbl})

    outputs = samm2pt5d_forward(params, packed, batched_input, multimask_output=False)
    outputs = jax.block_until_ready(outputs)

    assert len(outputs) == 2
    assert outputs[0]["masks"].shape == (1, 1, 20, 16)
    assert outputs[0]["masks"].dtype == jnp.bool_
    assert outputs[0]["iou_predictions"].shape == (1, 1)
    assert outputs[0]["low_res_logits"].shape == (1, 1, 16, 16)
    assert outputs[0]["high_res_logits"].shape == (1, 1, 20, 16)
    assert bool(jnp.all(jnp.isfinite(outputs[0]["high_res_logits"])))
    assert bool(jnp.all(jnp.isfinite(outputs[1]["high_res_logits"])))
    print("KERNEL_OK")
</pallas_src>

<mosaic_0001>
module attributes {stable_mosaic.version = 11 : i64} {
  func.func @_affine_resize_kernel(%arg0: memref<6x20x16xf32, #tpu.memory_space<vmem>>, %arg1: memref<6x1xf32, #tpu.memory_space<vmem>>, %arg2: memref<6x1xf32, #tpu.memory_space<vmem>>, %arg3: memref<32x20xf32, #tpu.memory_space<vmem>>, %arg4: memref<16x32xf32, #tpu.memory_space<vmem>>, %arg5: memref<32x32xf32, #tpu.memory_space<vmem>>, %arg6: memref<6x32x32xf32, #tpu.memory_space<vmem>>) attributes {dimension_semantics = [], scalar_prefetch = 0 : i64, scratch_operands = 0 : i64, tpu.core_type = #tpu.core_type<tc>} {
    %c0 = arith.constant 0 : index
    %c0_0 = arith.constant 0 : index
    %c0_1 = arith.constant 0 : index
    %0 = vector.load %arg0[%c0, %c0_0, %c0_1] : memref<6x20x16xf32, #tpu.memory_space<vmem>>, vector<6x20x16xf32>
    %c0_2 = arith.constant 0 : index
    %c0_3 = arith.constant 0 : index
    %1 = vector.load %arg3[%c0_2, %c0_3] : memref<32x20xf32, #tpu.memory_space<vmem>>, vector<32x20xf32>
    %2 = vector.shape_cast %1 : vector<32x20xf32> to vector<1x32x20xf32>
    %3 = vector.shape_cast %2 : vector<1x32x20xf32> to vector<1x32x20xf32>
    %4 = vector.broadcast %3 : vector<1x32x20xf32> to vector<6x32x20xf32>
    "tpu.trace_start"() <{level = 10 : i32, message = "noh,nhw->now"}> : () -> ()
    %cst = arith.constant dense<0.000000e+00> : vector<6x32x16xf32>
    %5 = tpu.matmul %4, %0, %cst {dimension_numbers = #tpu.dot_dimension_numbers<[2], [1], [1], [2], [0, 0, 0, 1, 1, 2], [0], [0]>} : vector<6x32x20xf32>, vector<6x20x16xf32>, vector<6x32x16xf32> -> vector<6x32x16xf32>
    "tpu.trace_stop"() : () -> ()
    %c0_4 = arith.constant 0 : index
    %c0_5 = arith.constant 0 : index
    %6 = vector.load %arg4[%c0_4, %c0_5] : memref<16x32xf32, #tpu.memory_space<vmem>>, vector<16x32xf32>
    "tpu.trace_start"() <{level = 10 : i32, message = "now,wc->noc"}> : () -> ()
    %cst_6 = arith.constant dense<0.000000e+00> : vector<6x32x32xf32>
    %7 = tpu.matmul %5, %6, %cst_6 {dimension_numbers = #tpu.dot_dimension_numbers<[2], [0], [0, 1], [1], [0, 0, 0, 1, 1, 1], [], []>} : vector<6x32x16xf32>, vector<16x32xf32>, vector<6x32x32xf32> -> vector<6x32x32xf32>
    "tpu.trace_stop"() : () -> ()
    %c0_7 = arith.constant 0 : index
    %c0_8 = arith.constant 0 : index
    %8 = vector.load %arg1[%c0_7, %c0_8] : memref<6x1xf32, #tpu.memory_space<vmem>>, vector<6x1xf32>
    %9 = vector.shape_cast %8 : vector<6x1xf32> to vector<6x1x1xf32>
    %10 = vector.broadcast %9 : vector<6x1x1xf32> to vector<6x32x32xf32>
    %11 = arith.mulf %10, %7 : vector<6x32x32xf32>
    %c0_9 = arith.constant 0 : index
    %c0_10 = arith.constant 0 : index
    %12 = vector.load %arg2[%c0_9, %c0_10] : memref<6x1xf32, #tpu.memory_space<vmem>>, vector<6x1xf32>
    %13 = vector.shape_cast %12 : vector<6x1xf32> to vector<6x1x1xf32>
    %c0_11 = arith.constant 0 : index
    %c0_12 = arith.constant 0 : index
    %14 = vector.load %arg5[%c0_11, %c0_12] : memref<32x32xf32, #tpu.memory_space<vmem>>, vector<32x32xf32>
    %15 = vector.shape_cast %14 : vector<32x32xf32> to vector<1x32x32xf32>
    %16 = vector.broadcast %13 : vector<6x1x1xf32> to vector<6x32x32xf32>
    %17 = vector.broadcast %15 : vector<1x32x32xf32> to vector<6x32x32xf32>
    %18 = arith.mulf %16, %17 : vector<6x32x32xf32>
    %19 = arith.addf %11, %18 : vector<6x32x32xf32>
    %c0_13 = arith.constant 0 : index
    %c0_14 = arith.constant 0 : index
    %c0_15 = arith.constant 0 : index
    %20 = vector.load %arg6[%c0_13, %c0_14, %c0_15] : memref<6x32x32xf32, #tpu.memory_space<vmem>>, vector<6x32x32xf32>
    tpu.vector_store %arg6[%c0_13, %c0_14, %c0_15], %19 {strides = array<i32>} : memref<6x32x32xf32, #tpu.memory_space<vmem>>, vector<6x32x32xf32>,
    return
  }
}

</mosaic_0001>

<bundles_post_ra>
// kernel: tpu_custom_call.1
= control target key start
LH: loop header
LB: loop body
LE: loop exit
PB: predicated region body
PF: predicated region fallthrough
CT: control target
= control target key end

     0   :  { %vm59_vm0 = vcmask 1043456   ;;  %vm46_vm1 = vcmask 162816   ;;  %s980_s0 = inlined_call_operand.vmem [shape: f32[6,20,16], index: 0, kind: input, shape index: {}]   ;;  %s981_s1 = inlined_call_operand.vmem [shape: f32[6,1], index: 1, kind: input, shape index: {}]   ;;  %s982_s2 = inlined_call_operand.vmem [shape: f32[6,1], index: 2, kind: input, shape index: {}]   ;;  %s983_s3 = inlined_call_operand.vmem [shape: f32[32,20], index: 3, kind: input, shape index: {}]   ;;  %s984_s4 = inlined_call_operand.vmem [shape: f32[16,32], index: 4, kind: input, shape index: {}]   ;;  %s985_s5 = inlined_call_operand.vmem [shape: f32[32,32], index: 5, kind: input, shape index: {}]   ;;  %s986_s6 = inlined_call_operand.hbm [shape: f32[6,32,32], index: 6, kind: output, shape index: {}]  }
   0x1   :  { %v26_v0 = vld [vmem:[%s980_s0 + $0x10] sm:$0xf]  ;;  %v32_v1 = vld [vmem:[%s980_s0 + $0x40] sm:$0xf]  ;;  %v25_v2 = vld [vmem:[%s980_s0 + $0x8] sm:$0xff] }
   0x2   :  { %609 = vmatpush.msk.msra.mxu0 %vm59_vm0, %v26_v0  ;;  %619 = vmatpush.msk.msra.mxu2 %vm59_vm0, %v32_v1  ;;  %v31_v3 = vld [vmem:[%s980_s0 + $0x38] sm:$0xff]  ;;  %v24_v4 = vld [vmem:[%s980_s0] sm:$0xff]  ;;  %v30_v5 = vld [vmem:[%s980_s0 + $0x30] sm:$0xff] }
   0x3   :  { %v42_v6 = vld [vmem:[%s983_s3] sm:$0xff]  ;;  %v35_v7 = vld [vmem:[%s980_s0 + $0x58] sm:$0xf]  ;;  %v29_v8 = vld [vmem:[%s980_s0 + $0x28] sm:$0xf] }
   0x4   :  { %77 = vmatpush.msra.mxu0 %v25_v2  ;;  %141 = vmatpush.msra.mxu2 %v31_v3 }
   0x6   :  { %78 = vmatpush.msra.mxu0 %v24_v4  ;;  %142 = vmatpush.msra.mxu2 %v30_v5 }
   0x7   :  { %11 = vsyncpa [#allocation3], 0  ;;  %610 = vmatmul.msk.f32.vlgmr.msra.gmra.mxu0 %vm46_vm1, %v42_v6  ;;  %620 = vmatmul.msk.f32.vlgmr.msra.gmra.mxu2 %vm46_vm1, %v42_v6  ;;  %v34_v9 = vld [vmem:[%s980_s0 + $0x50] sm:$0xff]  ;;  %v28_v10 = vld [vmem:[%s980_s0 + $0x20] sm:$0xff]  ;;  %v700_v25 = vmov 0   ;;  %vm254_vm2 = vcmask 130048  }
   0x8   :  { %624 = vmatpush.msk.msrb.mxu0 %vm59_vm0, %v35_v7  ;;  %614 = vmatpush.msk.msra.mxu1 %vm59_vm0, %v29_v8  ;;  %v33_v11 = vld [vmem:[%s980_s0 + $0x48] sm:$0xff]  ;;  %v27_v12 = vld [vmem:[%s980_s0 + $0x18] sm:$0xff]  ;;  %v38_v13 = vld [vmem:[%s980_s0 + $0x70] sm:$0xf]  ;;  %vm566_vm3 = vcmask 261120   ;;  %s597_s7 = sshll.u32 %s986_s6, 4  ;;  %s598_s7 = int_to_ptr.hbm [resolvable:$true] %s597_s7 }
   0x9   :  { %v43_v14 = vld [vmem:[%s983_s3 + $0x8] sm:$0xff]  ;;  %v44_v16 = vld [vmem:[%s983_s3 + $0x10] sm:$0xff]  ;;  %v36_v17 = vld [vmem:[%s980_s0 + $0x60] sm:$0xff]  ;;  %671 = vset.pattern.permute.xlu0 %v700_v25  ;;  %672 = vset.pattern.permute.xlu1 %v700_v25  ;;  %s702_s8 = smov 128   ;;  %s703_s9 = smov 8  }
   0xa   :  { %173 = vmatpush.msrb.mxu0 %v34_v9  ;;  %109 = vmatpush.msra.mxu1 %v28_v10  ;;  %v37_v15 = vld [vmem:[%s980_s0 + $0x68] sm:$0xff]  ;;  %v45_v18 = vld [vmem:[%s983_s3 + $0x18] sm:$0xff]  ;;  %v40_v20 = vld [vmem:[%s980_s0 + $0x80] sm:$0xff] }
   0xb   :  { %v41_v19 = vld [vmem:[%s980_s0 + $0x88] sm:$0xf]  ;;  %v39_v21 = vld [vmem:[%s980_s0 + $0x78] sm:$0xff]  ;;  %v416_v22 = vld [vmem:[%s981_s1] sm:$0x3f]  ;;  %673 = vset.pattern.permute.xlu2 %v700_v25 }
   0xc   :  { %174 = vmatpush.msrb.mxu0 %v33_v11  ;;  %110 = vmatpush.msra.mxu1 %v27_v12  ;;  %v423_v23 = vperm.slane %v416_v22, 0  ;;  %v253_v24 = vld [vmem:[%s984_s4 + $0x8] sm:$0xff]  ;;  %v252_v26 = vld [vmem:[%s984_s4] sm:$0xff]  ;;  %v418_v27 = vrot.slane %v416_v22, 1  ;;  %v419_v34 = vrot.slane %v416_v22, 2  ;;  %v421_v38 = vrot.slane %v416_v22, 4 }
   0xd   :  { %615 = vmatmul.msk.f32.vlgmr.msra.gmra.mxu1 %vm46_vm1, %v42_v6  ;;  %663 = vmatpush.msrb.mxu2 %v253_v24  ;;  %v847_v29 = vld [vmem:[%s982_s2] sm:$0x3f]  ;;  %v420_v39 = vrot.slane %v416_v22, 3  ;;  %v422_v47 = vrot.slane %v416_v22, 5 }
   0xe   :  { %629 = vmatpush.msk.msra.mxu0 %vm59_vm0, %v38_v13  ;;  %634 = vmatpush.msk.msrb.mxu1 %vm59_vm0, %v41_v19  ;;  %v424_v28 = vperm.slane %v418_v27, 0  ;;  %v488_v30 = vperm.slane %v847_v29, 0  ;;  %v425_v36 = vperm.slane %v419_v34, 0  ;;  %v481_v40 = vrot.slane %v847_v29, 3  ;;  %v883_v12 = vld [vmem:[%s985_s5] sm:$0xff] }
   0xf   :  { %611 = vmatmul.msk.f32.gmra.mxu0 %vm46_vm1, %v43_v14  ;;  %621 = vmatmul.msk.f32.gmra.mxu2 %vm46_vm1, %v43_v14  ;;  %v427_v42 = vperm.slane %v421_v38, 0  ;;  %v426_v43 = vperm.slane %v420_v39, 0  ;;  %v428_v49 = vperm.slane %v422_v47, 0  ;;  %v480_v52 = vrot.slane %v847_v29, 2 }
  0x10   :  { %205 = vmatpush.msra.mxu0 %v37_v15  ;;  %237 = vmatpush.msrb.mxu1 %v40_v20  ;;  %v491_v44 = vperm.slane %v481_v40, 0  ;;  %v479_v56 = vrot.slane %v847_v29, 1  ;;  %v482_v59 = vrot.slane %v847_v29, 4  ;;  %v483_v7 = vrot.slane %v847_v29, 5 }
  0x11   :  { %430 = vperm.xlu0 %671, %v423_v23   ;;  %664 = vmatpush.msra.mxu3 %v253_v24  ;;  %v490_v53 = vperm.slane %v480_v52, 0  ;;  %v899_v23 = vld [vmem:[%s985_s5 + $0x10] sm:$0xff] }
  0x12   :  { %206 = vmatpush.msra.mxu0 %v36_v17  ;;  %238 = vmatpush.msrb.mxu1 %v39_v21  ;;  %v489_v57 = vperm.slane %v479_v56, 0  ;;  %v492_v61 = vperm.slane %v482_v59, 0  ;;  %v493_v8 = vperm.slane %v483_v7, 0  ;;  %v890_v17 = vld [vmem:[%s985_s5 + $0x8] sm:$0xff] }
  0x13   :  { %665 = vmatpush.msrb.mxu2 %v252_v26  ;;  %666 = vmatpush.msra.mxu3 %v252_v26 }
  0x14   :  { %341 = vmatpush.msra.mxu1 %v253_v24  ;;  %438 = vperm.xlu1 %672, %v425_v36  }
  0x15   :  { %616 = vmatmul.msk.f32.gmra.mxu1 %vm46_vm1, %v43_v14  ;;  %446 = vperm.xlu2 %673, %v427_v42  }
  0x16   :  { %342 = vmatpush.msra.mxu1 %v252_v26 }
  0x17   :  { %612 = vmatmul.msk.f32.gmra.mxu0 %vm46_vm1, %v44_v16  ;;  %622 = vmatmul.msk.f32.gmra.mxu2 %vm46_vm1, %v44_v16 }
  0x19   :  { %434 = vperm.xlu0 %671, %v424_v28  }
  0x1c   :  { %442 = vperm.xlu1 %672, %v426_v43  }
  0x1d   :  { %617 = vmatmul.msk.f32.gmra.mxu1 %vm46_vm1, %v44_v16  ;;  %450 = vperm.xlu2 %673, %v428_v49  }
  0x1f   :  { %613 = vmatmul.msk.f32.gmra.mxu0 %vm46_vm1, %v45_v18  ;;  %623 = vmatmul.msk.f32.gmra.mxu2 %vm46_vm1, %v45_v18 }
  0x21   :  { %495 = vperm.xlu0 %671, %v488_v30   ;;  %v911_v30 = vld [vmem:[%s985_s5 + $0x18] sm:$0xff]  ;;  %s701_s5 = smov [#allocation2]  }
  0x22   :  { %s595_s28 = sshll.u32 %s701_s5, 4  ;;  %s596_s28 = int_to_ptr.vmem [resolvable:$true] %s595_s28 }
  0x24   :  { %499 = vperm.xlu1 %672, %v489_v57  }
  0x25   :  { %618 = vmatmul.msk.f32.gmra.mxu1 %vm46_vm1, %v45_v18  ;;  %503 = vperm.xlu2 %673, %v490_v53  }
  0x27   :  { %625 = vmatmul.msk.f32.vlgmr.msrb.gmra.mxu0 %vm46_vm1, %v42_v6 }
  0x29   :  { %507 = vperm.xlu0 %671, %v491_v44  }
  0x2c   :  { %511 = vperm.xlu1 %672, %v492_v61  }
  0x2d   :  { %635 = vmatmul.msk.f32.vlgmr.msrb.gmra.mxu1 %vm46_vm1, %v42_v6  ;;  %515 = vperm.xlu2 %673, %v493_v8  }
  0x2f   :  { %626 = vmatmul.msk.f32.gmra.mxu0 %vm46_vm1, %v43_v14 }
  0x35   :  { %636 = vmatmul.msk.f32.gmra.mxu1 %vm46_vm1, %v43_v14 }
  0x37   :  { %627 = vmatmul.msk.f32.gmra.mxu0 %vm46_vm1, %v44_v16 }
  0x3d   :  { %637 = vmatmul.msk.f32.gmra.mxu1 %vm46_vm1, %v44_v16 }
  0x3f   :  { %628 = vmatmul.msk.f32.gmra.mxu0 %vm46_vm1, %v45_v18 }
  0x45   :  { %638 = vmatmul.msk.f32.gmra.mxu1 %vm46_vm1, %v45_v18 }
  0x47   :  { %630 = vmatmul.msk.f32.vlgmr.msra.gmra.mxu0 %vm46_vm1, %v42_v6 }
  0x4f   :  { %631 = vmatmul.msk.f32.gmra.mxu0 %vm46_vm1, %v43_v14 }
  0x57   :  { %632 = vmatmul.msk.f32.gmra.mxu0 %vm46_vm1, %v44_v16 }
  0x5f   :  { %633 = vmatmul.msk.f32.gmra.mxu0 %vm46_vm1, %v45_v18 }
  0x6f   :  { %v894_v22 = vpop.permute.xlu2 %446 }
  0x77   :  { %v906_v29 = vpop.permute.xlu2 %450 }
  0x83   :  { %v431_v5 = vpop.permute.xlu0 %430 }
  0x84   :  { %v80_v31 = vpop.f32.mrf.mxu0 }
  0x85   :  { %639 = vmatmul.msk.f32.vlgmr.msra.gmra.mxu1 %vm254_vm2, %v80_v31 }
  0x86   :  { %v903_v27 = vpop.permute.xlu1 %438 }
  0x8a   :  { %v144_v32 = vpop.f32.mrf.mxu2  ;;  %v112_v46 = vpop.f32.mrf.mxu1 }
  0x8b   :  { %v877_v9 = vpop.permute.xlu0 %434 }
  0x8c   :  { %v83_v33 = vpop.f32.mrf.mxu0 }
  0x8d   :  { %640 = vmatmul.msk.f32.gmra.mxu1 %vm254_vm2, %v83_v33 }
  0x8e   :  { %v443_v31 = vpop.permute.xlu1 %442 }
  0x92   :  { %v147_v35 = vpop.f32.mrf.mxu2  ;;  %v115_v51 = vpop.f32.mrf.mxu1 }
  0x93   :  { %v496_v11 = vpop.permute.xlu0 %495 }
  0x94   :  { %v86_v37 = vpop.f32.mrf.mxu0  ;;  %v518_v13 = vmul.f32 %v496_v11, %v883_v12  ;;  %v519_v18 = vmul.f32 %v496_v11, %v890_v17  ;;  %v520_v24 = vmul.f32 %v496_v11, %v899_v23 }
  0x95   :  { %641 = vmatmul.msk.f32.gmra.mxu1 %vm254_vm2, %v86_v37 }
  0x96   :  { %v500_v39 = vpop.permute.xlu1 %499 }
  0x9a   :  { %v150_v41 = vpop.f32.mrf.mxu2  ;;  %v118_v55 = vpop.f32.mrf.mxu1 }
  0x9c   :  { %v89_v45 = vpop.f32.mrf.mxu0 }
  0x9d   :  { %642 = vmatmul.msk.f32.vlgmr.msrb.gmra.mxu2 %vm254_vm2, %v89_v45  ;;  %v508_v45 = vpop.permute.xlu0 %507 }
  0x9e   :  { %v530_v47 = vmul.f32 %v508_v45, %v883_v12  ;;  %v533_v7 = vmul.f32 %v508_v45, %v911_v30 }
  0xa2   :  { %v153_v48 = vpop.f32.mrf.mxu2  ;;  %v121_v60 = vpop.f32.mrf.mxu1 }
  0xa3   :  { %650 = vmatmul.msk.f32.vlgmr.msra.gmra.mxu3 %vm254_vm2, %v153_v48 }
  0xa4   :  { %v176_v50 = vpop.f32.mrf.mxu0 }
  0xa5   :  { %643 = vmatmul.msk.f32.gmra.mxu2 %vm254_vm2, %v112_v46 }
  0xaa   :  { %v240_v2 = vpop.f32.mrf.mxu1 }
  0xab   :  { %651 = vmatmul.msk.f32.gmra.mxu3 %vm254_vm2, %v176_v50  ;;  %v523_v50 = vmul.f32 %v500_v39, %v890_v17 }
  0xac   :  { %v179_v54 = vpop.f32.mrf.mxu0 }
  0xad   :  { %644 = vmatmul.msk.f32.gmra.mxu2 %vm254_vm2, %v115_v51 }
  0xb2   :  { %v243_v4 = vpop.f32.mrf.mxu1 }
  0xb3   :  { %652 = vmatmul.msk.f32.gmra.mxu3 %vm254_vm2, %v179_v54 }
  0xb4   :  { %v182_v58 = vpop.f32.mrf.mxu0 }
  0xb5   :  { %645 = vmatmul.msk.f32.gmra.mxu2 %vm254_vm2, %v118_v55  ;;  %v531_v55 = vmul.f32 %v508_v45, %v890_v17 }
  0xba   :  { %v246_v6 = vpop.f32.mrf.mxu1 }
  0xbb   :  { %653 = vmatmul.msk.f32.gmra.mxu3 %vm254_vm2, %v182_v58  ;;  %v524_v58 = vmul.f32 %v500_v39, %v899_v23 }
  0xbc   :  { %v185_v62 = vpop.f32.mrf.mxu0 }
  0xbd   :  { %646 = vmatmul.msk.f32.gmra.mxu2 %vm254_vm2, %v121_v60 }
  0xc2   :  { %v249_v10 = vpop.f32.mrf.mxu1 }
  0xc3   :  { %654 = vmatmul.msk.f32.gmra.mxu3 %vm254_vm2, %v185_v62 }
  0xc4   :  { %v208_v63 = vpop.f32.mrf.mxu0 }
  0xc5   :  { %647 = vmatmul.msk.f32.gmra.mxu2 %vm254_vm2, %v144_v32  ;;  %v521_v32 = vmul.f32 %v496_v11, %v911_v30 }
  0xcb   :  { %655 = vmatmul.msk.f32.gmra.mxu3 %vm254_vm2, %v208_v63  ;;  %v532_v63 = vmul.f32 %v508_v45, %v899_v23 }
  0xcc   :  { %v211_v0 = vpop.f32.mrf.mxu0 }
  0xcd   :  { %648 = vmatmul.msk.f32.gmra.mxu2 %vm254_vm2, %v147_v35  ;;  %v914_v35 = vpop.permute.xlu2 %503 }
  0xce   :  { %v529_v37 = vmul.f32 %v914_v35, %v911_v30  ;;  %v526_v11 = vmul.f32 %v914_v35, %v883_v12 }
  0xd3   :  { %656 = vmatmul.msk.f32.gmra.mxu3 %vm254_vm2, %v211_v0 }
  0xd4   :  { %v214_v1 = vpop.f32.mrf.mxu0 }
  0xd5   :  { %649 = vmatmul.msk.f32.gmra.mxu2 %vm254_vm2, %v150_v41  ;;  %v522_v41 = vmul.f32 %v500_v39, %v883_v12 }
  0xdb   :  { %657 = vmatmul.msk.f32.gmra.mxu3 %vm254_vm2, %v214_v1 }
  0xdc   :  { %v217_v3 = vpop.f32.mrf.mxu0 }
  0xe3   :  { %658 = vmatmul.msk.f32.gmra.mxu3 %vm254_vm2, %v217_v3 }
  0xeb   :  { %659 = vmatmul.msk.f32.gmra.mxu3 %vm254_vm2, %v240_v2  ;;  %v525_v2 = vmul.f32 %v500_v39, %v911_v30 }
  0xf3   :  { %660 = vmatmul.msk.f32.gmra.mxu3 %vm254_vm2, %v243_v4 }
  0xfb   :  { %661 = vmatmul.msk.f32.gmra.mxu3 %vm254_vm2, %v246_v6 }
 0x102   :  { %v344_v14 = vpop.f32.mrf.mxu1 }
 0x103   :  { %662 = vmatmul.msk.f32.gmra.mxu3 %vm254_vm2, %v249_v10  ;;  %v453_v15 = vmul.f32 %v431_v5, %v344_v14 }
 0x105   :  { %v542_v16 = vadd.f32 %v518_v13, %v453_v15 }
 0x107   :  { %567 = vst.msk [vmem:[#allocation2] sm:$0xff] %vm566_vm3, %v542_v16  ;;  %v512_v16 = vpop.permute.xlu1 %511 }
 0x10a   :  { %v347_v19 = vpop.f32.mrf.mxu1 }
 0x10b   :  { %v454_v20 = vmul.f32 %v431_v5, %v347_v19 }
 0x10d   :  { %v543_v21 = vadd.f32 %v519_v18, %v454_v20  ;;  %v534_v18 = vmul.f32 %v512_v16, %v883_v12 }
 0x10f   :  { %568 = vst.msk [vmem:[#allocation2 + $0x8] sm:$0xff] %vm566_vm3, %v543_v21  ;;  %v527_v21 = vmul.f32 %v914_v35, %v890_v17 }
 0x112   :  { %v350_v25 = vpop.f32.mrf.mxu1 }
 0x113   :  { %v455_v26 = vmul.f32 %v431_v5, %v350_v25 }
 0x115   :  { %v544_v28 = vadd.f32 %v520_v24, %v455_v26 }
 0x117   :  { %569 = vst.msk [vmem:[#allocation2 + $0x10] sm:$0xff] %vm566_vm3, %v544_v28 }
 0x120   :  { %v353_v33 = vpop.f32.mrf.mxu2 }
 0x121   :  { %v456_v34 = vmul.f32 %v431_v5, %v353_v33 }
 0x123   :  { %v545_v36 = vadd.f32 %v521_v32, %v456_v34  ;;  %v528_v34 = vmul.f32 %v914_v35, %v899_v23 }
 0x125   :  { %570 = vst.msk [vmem:[#allocation2 + $0x18] sm:$0xff] %vm566_vm3, %v545_v36 }
 0x126   :  { %v377_v38 = vpop.f32.mrf.mxu3 }
 0x127   :  { %v464_v40 = vmul.f32 %v903_v27, %v377_v38 }
 0x128   :  { %v356_v42 = vpop.f32.mrf.mxu2 }
 0x129   :  { %v553_v43 = vadd.f32 %v529_v37, %v464_v40  ;;  %v457_v44 = vmul.f32 %v877_v9, %v356_v42  ;;  %v536_v40 = vmul.f32 %v512_v16, %v899_v23 }
 0x12b   :  { %578 = vst.msk [vmem:[#allocation2 + $0x58] sm:$0xff] %vm566_vm3, %v553_v43  ;;  %v546_v46 = vadd.f32 %v522_v41, %v457_v44  ;;  %v537_v44 = vmul.f32 %v512_v16, %v911_v30 }
 0x12d   :  { %571 = vst.msk [vmem:[#allocation2 + $0x20] sm:$0xff] %vm566_vm3, %v546_v46 }
 0x12e   :  { %v380_v48 = vpop.f32.mrf.mxu3 }
 0x12f   :  { %v465_v49 = vmul.f32 %v443_v31, %v380_v48 }
 0x130   :  { %v359_v51 = vpop.f32.mrf.mxu2 }
 0x131   :  { %v554_v52 = vadd.f32 %v530_v47, %v465_v49  ;;  %v458_v53 = vmul.f32 %v877_v9, %v359_v51 }
 0x133   :  { %579 = vst.msk [vmem:[#allocation2 + $0x60] sm:$0xff] %vm566_vm3, %v554_v52  ;;  %v547_v54 = vadd.f32 %v523_v50, %v458_v53 }
 0x135   :  { %572 = vst.msk [vmem:[#allocation2 + $0x28] sm:$0xff] %vm566_vm3, %v547_v54 }
 0x136   :  { %v383_v56 = vpop.f32.mrf.mxu3 }
 0x137   :  { %v466_v57 = vmul.f32 %v443_v31, %v383_v56 }
 0x138   :  { %v362_v59 = vpop.f32.mrf.mxu2 }
 0x139   :  { %v555_v60 = vadd.f32 %v531_v55, %v466_v57  ;;  %v459_v61 = vmul.f32 %v877_v9, %v362_v59 }
 0x13b   :  { %580 = vst.msk [vmem:[#allocation2 + $0x68] sm:$0xff] %vm566_vm3, %v555_v60  ;;  %v548_v62 = vadd.f32 %v524_v58, %v459_v61 }
 0x13d   :  { %573 = vst.msk [vmem:[#allocation2 + $0x30] sm:$0xff] %vm566_vm3, %v548_v62 }
 0x13e   :  { %v386_v0 = vpop.f32.mrf.mxu3 }
 0x13f   :  { %v467_v1 = vmul.f32 %v443_v31, %v386_v0 }
 0x140   :  { %v365_v3 = vpop.f32.mrf.mxu2 }
 0x141   :  { %v556_v4 = vadd.f32 %v532_v63, %v467_v1  ;;  %v460_v5 = vmul.f32 %v877_v9, %v365_v3 }
 0x143   :  { %581 = vst.msk [vmem:[#allocation2 + $0x70] sm:$0xff] %vm566_vm3, %v556_v4  ;;  %v549_v6 = vadd.f32 %v525_v2, %v460_v5 }
 0x145   :  { %574 = vst.msk [vmem:[#allocation2 + $0x38] sm:$0xff] %vm566_vm3, %v549_v6 }
 0x146   :  { %v389_v8 = vpop.f32.mrf.mxu3 }
 0x147   :  { %v468_v10 = vmul.f32 %v443_v31, %v389_v8  ;;  %v535_v31 = vmul.f32 %v512_v16, %v890_v17 }
 0x148   :  { %v368_v13 = vpop.f32.mrf.mxu2 }
 0x149   :  { %v557_v14 = vadd.f32 %v533_v7, %v468_v10  ;;  %v461_v15 = vmul.f32 %v903_v27, %v368_v13 }
 0x14b   :  { %582 = vst.msk [vmem:[#allocation2 + $0x78] sm:$0xff] %vm566_vm3, %v557_v14  ;;  %v550_v9 = vadd.f32 %v526_v11, %v461_v15 }
 0x14d   :  { %575 = vst.msk [vmem:[#allocation2 + $0x40] sm:$0xff] %vm566_vm3, %v550_v9 }
 0x14e   :  { %v392_v19 = vpop.f32.mrf.mxu3 }
 0x14f   :  { %v469_v20 = vmul.f32 %v894_v22, %v392_v19 }
 0x150   :  { %v371_v24 = vpop.f32.mrf.mxu2 }
 0x151   :  { %v558_v25 = vadd.f32 %v534_v18, %v469_v20  ;;  %v462_v26 = vmul.f32 %v903_v27, %v371_v24 }
 0x153   :  { %583 = vst.msk [vmem:[#allocation2 + $0x80] sm:$0xff] %vm566_vm3, %v558_v25  ;;  %v551_v28 = vadd.f32 %v527_v21, %v462_v26 }
 0x155   :  { %576 = vst.msk [vmem:[#allocation2 + $0x48] sm:$0xff] %vm566_vm3, %v551_v28 }
 0x156   :  { %v395_v32 = vpop.f32.mrf.mxu3 }
 0x157   :  { %v470_v33 = vmul.f32 %v894_v22, %v395_v32 }
 0x158   :  { %v374_v36 = vpop.f32.mrf.mxu2 }
 0x159   :  { %v559_v37 = vadd.f32 %v535_v31, %v470_v33  ;;  %v463_v38 = vmul.f32 %v903_v27, %v374_v36  ;;  %v516_v27 = vpop.permute.xlu2 %515 }
 0x15a   :  { %v538_v47 = vmul.f32 %v516_v27, %v883_v12  ;;  %v539_v52 = vmul.f32 %v516_v27, %v890_v17  ;;  %v540_v55 = vmul.f32 %v516_v27, %v899_v23  ;;  %v541_v57 = vmul.f32 %v516_v27, %v911_v30 }
 0x15b   :  { %584 = vst.msk [vmem:[#allocation2 + $0x88] sm:$0xff] %vm566_vm3, %v559_v37  ;;  %v552_v39 = vadd.f32 %v528_v34, %v463_v38 }
 0x15d   :  { %577 = vst.msk [vmem:[#allocation2 + $0x50] sm:$0xff] %vm566_vm3, %v552_v39 }
 0x15e   :  { %v398_v41 = vpop.f32.mrf.mxu3 }
 0x15f   :  { %v471_v42 = vmul.f32 %v894_v22, %v398_v41 }
 0x161   :  { %v560_v43 = vadd.f32 %v536_v40, %v471_v42 }
 0x163   :  { %585 = vst.msk [vmem:[#allocation2 + $0x90] sm:$0xff] %vm566_vm3, %v560_v43 }
 0x166   :  { %v401_v35 = vpop.f32.mrf.mxu3 }
 0x167   :  { %v472_v45 = vmul.f32 %v894_v22, %v401_v35 }
 0x169   :  { %v561_v46 = vadd.f32 %v537_v44, %v472_v45 }
 0x16b   :  { %586 = vst.msk [vmem:[#allocation2 + $0x98] sm:$0xff] %vm566_vm3, %v561_v46 }
 0x16e   :  { %v404_v48 = vpop.f32.mrf.mxu3 }
 0x16f   :  { %v473_v49 = vmul.f32 %v906_v29, %v404_v48 }
 0x171   :  { %v562_v50 = vadd.f32 %v538_v47, %v473_v49 }
 0x173   :  { %587 = vst.msk [vmem:[#allocation2 + $0xa0] sm:$0xff] %vm566_vm3, %v562_v50 }
 0x176   :  { %v407_v51 = vpop.f32.mrf.mxu3 }
 0x177   :  { %v474_v53 = vmul.f32 %v906_v29, %v407_v51 }
 0x179   :  { %v563_v54 = vadd.f32 %v539_v52, %v474_v53 }
 0x17b   :  { %588 = vst.msk [vmem:[#allocation2 + $0xa8] sm:$0xff] %vm566_vm3, %v563_v54 }
 0x17e   :  { %v410_v22 = vpop.f32.mrf.mxu3 }
 0x17f   :  { %v475_v56 = vmul.f32 %v906_v29, %v410_v22 }
 0x181   :  { %v564_v12 = vadd.f32 %v540_v55, %v475_v56 }
 0x183   :  { %589 = vst.msk [vmem:[#allocation2 + $0xb0] sm:$0xff] %vm566_vm3, %v564_v12 }
 0x186   :  { %v413_v17 = vpop.f32.mrf.mxu3 }
 0x187   :  { %v476_v58 = vmul.f32 %v906_v29, %v413_v17 }
 0x189   :  { %v565_v59 = vadd.f32 %v541_v57, %v476_v58 }
 0x18b   :  { %590 = vst.msk [vmem:[#allocation2 + $0xb8] sm:$0xff] %vm566_vm3, %v565_v59 }
 0x18c   :  { %603 = dma.vmem_to_hbm [thread:$0]  %s596_s28, 3072, %s598_s7, [#allocation3], %s702_s8, %s702_s8, %s703_s9  }
 0x18d   :  { %698 = dma.done.wait [#allocation3], 3072  }
 0x18e   :  { %699 = vsyncadd [#allocation3], 4294964224 }
 0x18f   :  { %608 = vsyncpa [#allocation3], 1 }

</bundles_post_ra>
